<compile_context>
chip_gen: v7x
topology: tpu7x:2x2x1
jax: 0.10.0
libtpu: 0.0.40
codegen_flags: <defaults>
</compile_context>

<pallas_src>
import math
from functools import partial

import jax
import jax.numpy as jnp
from jax.experimental import pallas as pl
from jax.experimental.pallas import tpu as pltpu


# ------------------------------ small helpers -------------------------------

def _round_up(x, m):
    return ((x + m - 1) // m) * m


def _bf16_round(a):
    return a.astype(jnp.bfloat16).astype(jnp.float32)


def _pick_tile_h(H, N):
    """Largest row tile that divides H and still yields >= 4 grid steps."""
    for th in (64, 32, 16, 8, 4, 2, 1):
        if H % th == 0 and (H // th) * N >= 4:
            return th
    return H


def _conv3x3_toeplitz(w_hwio, W, in_lanes, out_lanes):
    """Fold kx taps + 'same' width padding + lane padding of a 3x3 conv into
    per-ky block-Toeplitz matmul weights.

    Returns T with shape (3, in_lanes, out_lanes) and
      T[ky][w_in*Cin + ci, w_out*Cout + co] = w_hwio[ky, w_in - w_out + 1, ci, co]
    (zero outside the 3-tap band and in the lane padding), so that
      conv_out[., w_out, co] = sum_ky  row_view_ky @ T[ky]
    where row_view_ky is a contiguous (rows, W*Cin) view of the input tile.
    """
    KH, KW, Cin, Cout = w_hwio.shape
    w_in = jnp.arange(W)
    w_out = jnp.arange(W)
    kx = w_in[:, None] - w_out[None, :] + 1                 # (W, W)
    valid = (kx >= 0) & (kx < KW)
    kxc = jnp.clip(kx, 0, KW - 1)
    ts = []
    for ky in range(KH):
        blk = w_hwio[ky][kxc]                                # (W, W, Cin, Cout)
        blk = jnp.where(valid[:, :, None, None], blk, 0.0)
        t = jnp.transpose(blk, (0, 2, 1, 3)).reshape(W * Cin, W * Cout)
        t = jnp.pad(t, ((0, in_lanes - W * Cin), (0, out_lanes - W * Cout)))
        ts.append(t)
    return jnp.stack(ts).astype(jnp.bfloat16)


def _tile_lanes(v, W, lanes):
    """Per-channel BN scale/bias -> lane layout (1, lanes) with lane = w*C + c."""
    v = jnp.tile(v.astype(jnp.float32), W)                   # (W*C,)
    return jnp.pad(v, (0, lanes - v.shape[0])).reshape(1, lanes)


# ------------------------------- Pallas kernel -------------------------------

def _bottleneck_kernel(xw_ref, t1_ref, t2_ref, s1_ref, b1_ref, s2_ref, b2_ref,
                       o_ref, *, tile_h, n_tiles, add):
    """Fused cv2(cv1(x)) (+ residual) for one row tile.

    xw_ref : (1, tile_h + 4, Wi)  bf16 input window (2-row halo each side,
                                   lanes = w*Cin + ci, zero padded)
    t1_ref : (3, Wi, Wm)          bf16 cv1 block-Toeplitz weights (per ky)
    t2_ref : (3, Wm, Wo)          bf16 cv2 block-Toeplitz weights (per ky)
    s*/b*  : (1, Wm) / (1, Wo)    f32 folded BN scale / bias (lane layout)
    o_ref  : (1, tile_h, Wo)      f32 output tile (lanes = w*Cout + co)
    """
    th = tile_h
    xw = xw_ref[0]                                           # (th+4, Wi) bf16

    # ---- cv1: intermediate rows [-1, th+1) relative to this tile (1-row halo
    # for cv2).  3 matmuls on contiguous row views; kx folded into t1.
    wm = t1_ref.shape[-1]
    acc1 = jnp.zeros((th + 2, wm), jnp.float32)
    for ky in range(3):                                      # static unroll
        acc1 = acc1 + jnp.dot(xw[ky:ky + th + 2, :], t1_ref[ky],
                              preferred_element_type=jnp.float32)
    y1 = acc1 * s1_ref[...] + b1_ref[...]                    # folded BN (f32)
    y1 = y1 * jax.nn.sigmoid(y1)                             # SiLU (f32)

    # cv2's 'same' padding: intermediate rows falling outside the image must
    # be zero (NOT cv1 applied to zero-padded input, which is SiLU(bias) != 0).
    t = pl.program_id(0) % n_tiles
    rows = jax.lax.broadcasted_iota(jnp.int32, (th + 2, 1), 0)
    drop = ((rows == 0) & (t == 0)) | ((rows == th + 1) & (t == n_tiles - 1))
    y1 = jnp.where(drop, 0.0, y1).astype(jnp.bfloat16)       # bf16 for the MXU

    # ---- cv2 ----
    wo = o_ref.shape[-1]
    acc2 = jnp.zeros((th, wo), jnp.float32)
    for ky in range(3):
        acc2 = acc2 + jnp.dot(y1[ky:ky + th, :], t2_ref[ky],
                              preferred_element_type=jnp.float32)
    y2 = acc2 * s2_ref[...] + b2_ref[...]
    y2 = y2 * jax.nn.sigmoid(y2)

    if add:
        # Residual read straight from the resident input window (rows 2..2+th
        # are exactly this tile's image rows).  bf16-rounded residual.
        y2 = y2 + xw[2:2 + th, :].astype(jnp.float32)

    o_ref[0] = y2.astype(o_ref.dtype)


# -------------------------------- JAX wrapper --------------------------------

def bottleneck_forward(params, x_nchw, shortcut=True, tile_h=None):
    N, C1, H, W = x_nchw.shape
    w1, w2 = params["w1"], params["w2"]
    Cmid, C2 = w1.shape[-1], w2.shape[-1]
    add = bool(shortcut and C1 == C2)

    if tile_h is None:
        tile_h = _pick_tile_h(H, N)
    n_tiles = H // tile_h
    G = N * n_tiles

    LANE = 128
    Wi = _round_up(W * C1, LANE)     # input window lane width
    Wm = _round_up(W * Cmid, LANE)   # intermediate lane width
    Wo = _round_up(W * C2, LANE)     # output lane width (dense stores)
    if add:
        assert Wi == Wo              # c1 == c2 => identical lane layout

    # Activations: NCHW -> NHWC -> (N, H, W*C1) row-contiguous layout, 2-row
    # zero halo in H, lane pad, bf16, then gather overlapping (tile_h+4)-row
    # windows so the grid uses plain non-overlapping BlockSpecs.
    x_nhwc = jnp.transpose(x_nchw, (0, 2, 3, 1))
    x2 = x_nhwc.reshape(N, H, W * C1)
    x2 = jnp.pad(x2, ((0, 0), (2, 2), (0, Wi - W * C1)))
    win = (jnp.arange(n_tiles) * tile_h)[:, None] + jnp.arange(tile_h + 4)[None, :]
    xw = x2[:, win, :].reshape(G, tile_h + 4, Wi).astype(jnp.bfloat16)

    # Weights: kx taps + width padding + lane padding folded into Toeplitz mats.
    t1 = _conv3x3_toeplitz(w1, W, Wi, Wm)
    t2 = _conv3x3_toeplitz(w2, W, Wm, Wo)
    s1 = _tile_lanes(params["s1"], W, Wm)
    b1 = _tile_lanes(params["b1"], W, Wm)
    s2 = _tile_lanes(params["s2"], W, Wo)
    b2 = _tile_lanes(params["b2"], W, Wo)

    kernel = partial(_bottleneck_kernel, tile_h=tile_h, n_tiles=n_tiles, add=add)
    out = pl.pallas_call(
        kernel,
        out_shape=jax.ShapeDtypeStruct((G, tile_h, Wo), jnp.float32),
        grid=(G,),
        in_specs=[
            pl.BlockSpec((1, tile_h + 4, Wi), lambda i: (i, 0, 0)),   # windows
            pl.BlockSpec((3, Wi, Wm), lambda i: (0, 0, 0)),           # t1 (resident)
            pl.BlockSpec((3, Wm, Wo), lambda i: (0, 0, 0)),           # t2 (resident)
            pl.BlockSpec((1, Wm), lambda i: (0, 0)),                  # s1
            pl.BlockSpec((1, Wm), lambda i: (0, 0)),                  # b1
            pl.BlockSpec((1, Wo), lambda i: (0, 0)),                  # s2
            pl.BlockSpec((1, Wo), lambda i: (0, 0)),                  # b2
        ],
        out_specs=pl.BlockSpec((1, tile_h, Wo), lambda i: (i, 0, 0)),
        compiler_params=pltpu.CompilerParams(
            dimension_semantics=("parallel",)),
    )(xw, t1, t2, s1, b1, s2, b2)

    y = out.reshape(N, H, Wo)[:, :, :W * C2].reshape(N, H, W, C2)
    return jnp.transpose(y, (0, 3, 1, 2))                    # NHWC -> NCHW


# ------------------------------ params / BN fold ------------------------------

def fold_bn(gamma, beta, mean, var, eps=1e-5):
    inv = gamma / jnp.sqrt(var + eps)
    return inv, beta - mean * inv


def init_bottleneck_params(key, c1, c2, e=0.5):
    c_ = int(c2 * e)
    ks = jax.random.split(key, 10)
    w1 = jax.random.normal(ks[0], (3, 3, c1, c_), jnp.float32) / math.sqrt(9 * c1)
    w2 = jax.random.normal(ks[1], (3, 3, c_, c2), jnp.float32) / math.sqrt(9 * c_)

    g1 = 1.0 + 0.1 * jax.random.normal(ks[2], (c_,), jnp.float32)
    b1 = 0.1 * jax.random.normal(ks[3], (c_,), jnp.float32)
    m1 = 0.1 * jax.random.normal(ks[4], (c_,), jnp.float32)
    v1 = jnp.abs(1.0 + 0.1 * jax.random.normal(ks[5], (c_,), jnp.float32))

    g2 = 1.0 + 0.1 * jax.random.normal(ks[6], (c2,), jnp.float32)
    b2 = 0.1 * jax.random.normal(ks[7], (c2,), jnp.float32)
    m2 = 0.1 * jax.random.normal(ks[8], (c2,), jnp.float32)
    v2 = jnp.abs(1.0 + 0.1 * jax.random.normal(ks[9], (c2,), jnp.float32))

    s1, bb1 = fold_bn(g1, b1, m1, v1)
    s2, bb2 = fold_bn(g2, b2, m2, v2)
    return {"w1": w1, "s1": s1, "b1": bb1, "w2": w2, "s2": s2, "b2": bb2}


# ----------------------------- pure-JAX reference -----------------------------

def _ref_conv(x, w, s, b):
    y = jax.lax.conv_general_dilated(
        x, w, window_strides=(1, 1), padding="SAME",
        dimension_numbers=("NHWC", "HWIO", "NHWC"))
    y = y * s.reshape(1, 1, 1, -1) + b.reshape(1, 1, 1, -1)
    return y * jax.nn.sigmoid(y)


def bottleneck_ref(params, x_nchw, shortcut=True):
    c1 = x_nchw.shape[1]
    c2 = params["w2"].shape[-1]
    add = shortcut and (c1 == c2)
    x = jnp.transpose(x_nchw, (0, 2, 3, 1))
    y = _ref_conv(x, params["w1"], params["s1"], params["b1"])
    y = _ref_conv(y, params["w2"], params["s2"], params["b2"])
    if add:
        y = x + y
    return jnp.transpose(y, (0, 3, 1, 2))


# ------------------------------------ main ------------------------------------

if __name__ == "__main__":
    key = jax.random.PRNGKey(0)
    kx, kp = jax.random.split(key)

    N, C, H, W = 2, 4, 16, 16            # c1 == c2 -> shortcut add is active
    x = _bf16_round(jax.random.normal(kx, (N, C, H, W), jnp.float32))
    params = init_bottleneck_params(kp, C, C, e=0.5)
    # Make conv weights bf16-representable so the f32 reference comparison is
    # tight (the kernel's matmul path is intentionally bf16).
    params = {k: (_bf16_round(v) if k in ("w1", "w2") else v)
              for k, v in params.items()}

    fwd = jax.jit(lambda p, xx: bottleneck_forward(p, xx, shortcut=True))
    out = jax.block_until_ready(fwd(params, x))

    ref = bottleneck_ref(params, x, shortcut=True)
    assert out.shape == (N, C, H, W)
    err = float(jnp.max(jnp.abs(out - ref)))
    assert bool(jnp.allclose(out, ref, atol=3e-2, rtol=3e-2)), err

    print("KERNEL_OK")
</pallas_src>

<mosaic_0001>
module attributes {stable_mosaic.version = 11 : i64} {
  func.func @_bottleneck_kernel(%arg0: i32, %arg1: memref<1x12x128xbf16, #tpu.memory_space<vmem>>, %arg2: memref<3x128x128xbf16, #tpu.memory_space<vmem>>, %arg3: memref<3x128x128xbf16, #tpu.memory_space<vmem>>, %arg4: memref<1x128xf32, #tpu.memory_space<vmem>>, %arg5: memref<1x128xf32, #tpu.memory_space<vmem>>, %arg6: memref<1x128xf32, #tpu.memory_space<vmem>>, %arg7: memref<1x128xf32, #tpu.memory_space<vmem>>, %arg8: memref<1x8x128xf32, #tpu.memory_space<vmem>>) attributes {dimension_semantics = [#tpu.dimension_semantics<parallel>], iteration_bounds = array<i64: 4>, scalar_prefetch = 0 : i64, scratch_operands = 0 : i64, tpu.core_type = #tpu.core_type<tc>, window_params = [{transform_indices = @transform_0, window_bounds = array<i64: 1, 12, 128>}, {pipeline_mode = #tpu.pipeline_mode<synchronous>, transform_indices = @transform_1, window_bounds = array<i64: 3, 128, 128>}, {pipeline_mode = #tpu.pipeline_mode<synchronous>, transform_indices = @transform_2, window_bounds = array<i64: 3, 128, 128>}, {pipeline_mode = #tpu.pipeline_mode<synchronous>, transform_indices = @transform_3, window_bounds = array<i64: 1, 128>}, {pipeline_mode = #tpu.pipeline_mode<synchronous>, transform_indices = @transform_4, window_bounds = array<i64: 1, 128>}, {pipeline_mode = #tpu.pipeline_mode<synchronous>, transform_indices = @transform_5, window_bounds = array<i64: 1, 128>}, {pipeline_mode = #tpu.pipeline_mode<synchronous>, transform_indices = @transform_6, window_bounds = array<i64: 1, 128>}, {transform_indices = @transform_7, window_bounds = array<i64: 1, 8, 128>}]} {
    %c0 = arith.constant 0 : index
    %c0_0 = arith.constant 0 : index
    %c0_1 = arith.constant 0 : index
    %0 = vector.load %arg1[%c0, %c0_0, %c0_1] : memref<1x12x128xbf16, #tpu.memory_space<vmem>>, vector<1x12x128xbf16>
    %1 = vector.shape_cast %0 : vector<1x12x128xbf16> to vector<12x128xbf16>
    %cst = arith.constant 0.000000e+00 : f32
    %2 = vector.broadcast %cst : f32 to vector<10x128xf32>
    %3 = vector.extract_strided_slice %1 {offsets = [0, 0], sizes = [10, 128], strides = [1, 1]} : vector<12x128xbf16> to vector<10x128xbf16>
    %c0_2 = arith.constant 0 : index
    %c0_3 = arith.constant 0 : index
    %c0_4 = arith.constant 0 : index
    %4 = vector.load %arg2[%c0_2, %c0_3, %c0_4] : memref<3x128x128xbf16, #tpu.memory_space<vmem>>, vector<1x128x128xbf16>
    %5 = vector.shape_cast %4 : vector<1x128x128xbf16> to vector<128x128xbf16>
    %cst_5 = arith.constant dense<0.000000e+00> : vector<10x128xf32>
    %6 = tpu.matmul %3, %5, %cst_5 {dimension_numbers = #tpu.dot_dimension_numbers<[1], [0], [0], [1], [0, 0, 1, 1], [], []>} : vector<10x128xbf16>, vector<128x128xbf16>, vector<10x128xf32> -> vector<10x128xf32>
    %7 = arith.addf %2, %6 : vector<10x128xf32>
    %8 = vector.extract_strided_slice %1 {offsets = [1, 0], sizes = [10, 128], strides = [1, 1]} : vector<12x128xbf16> to vector<10x128xbf16>
    %c1 = arith.constant 1 : index
    %c0_6 = arith.constant 0 : index
    %c0_7 = arith.constant 0 : index
    %9 = vector.load %arg2[%c1, %c0_6, %c0_7] : memref<3x128x128xbf16, #tpu.memory_space<vmem>>, vector<1x128x128xbf16>
    %10 = vector.shape_cast %9 : vector<1x128x128xbf16> to vector<128x128xbf16>
    %cst_8 = arith.constant dense<0.000000e+00> : vector<10x128xf32>
    %11 = tpu.matmul %8, %10, %cst_8 {dimension_numbers = #tpu.dot_dimension_numbers<[1], [0], [0], [1], [0, 0, 1, 1], [], []>} : vector<10x128xbf16>, vector<128x128xbf16>, vector<10x128xf32> -> vector<10x128xf32>
    %12 = arith.addf %7, %11 : vector<10x128xf32>
    %13 = vector.extract_strided_slice %1 {offsets = [2, 0], sizes = [10, 128], strides = [1, 1]} : vector<12x128xbf16> to vector<10x128xbf16>
    %c2 = arith.constant 2 : index
    %c0_9 = arith.constant 0 : index
    %c0_10 = arith.constant 0 : index
    %14 = vector.load %arg2[%c2, %c0_9, %c0_10] : memref<3x128x128xbf16, #tpu.memory_space<vmem>>, vector<1x128x128xbf16>
    %15 = vector.shape_cast %14 : vector<1x128x128xbf16> to vector<128x128xbf16>
    %cst_11 = arith.constant dense<0.000000e+00> : vector<10x128xf32>
    %16 = tpu.matmul %13, %15, %cst_11 {dimension_numbers = #tpu.dot_dimension_numbers<[1], [0], [0], [1], [0, 0, 1, 1], [], []>} : vector<10x128xbf16>, vector<128x128xbf16>, vector<10x128xf32> -> vector<10x128xf32>
    %17 = arith.addf %12, %16 : vector<10x128xf32>
    %c0_12 = arith.constant 0 : index
    %c0_13 = arith.constant 0 : index
    %18 = vector.load %arg4[%c0_12, %c0_13] : memref<1x128xf32, #tpu.memory_space<vmem>>, vector<1x128xf32>
    %19 = vector.broadcast %18 : vector<1x128xf32> to vector<10x128xf32>
    %20 = arith.mulf %17, %19 : vector<10x128xf32>
    %c0_14 = arith.constant 0 : index
    %c0_15 = arith.constant 0 : index
    %21 = vector.load %arg5[%c0_14, %c0_15] : memref<1x128xf32, #tpu.memory_space<vmem>>, vector<1x128xf32>
    %22 = vector.broadcast %21 : vector<1x128xf32> to vector<10x128xf32>
    %23 = arith.addf %20, %22 : vector<10x128xf32>
    %24 = arith.negf %23 : vector<10x128xf32>
    %25 = math.exp %24 : vector<10x128xf32>
    %cst_16 = arith.constant 1.000000e+00 : f32
    %26 = vector.broadcast %cst_16 : f32 to vector<10x128xf32>
    %27 = arith.addf %26, %25 : vector<10x128xf32>
    %28 = arith.divf %26, %27 : vector<10x128xf32>
    %29 = arith.mulf %23, %28 : vector<10x128xf32>
    %c2_i32 = arith.constant 2 : i32
    %c0_i32 = arith.constant 0 : i32
    %30 = arith.cmpi eq, %c2_i32, %c0_i32 : i32
    %c1_i32 = arith.constant 1 : i32
    %31 = arith.select %30, %c1_i32, %c2_i32 : i32
    %32 = arith.remsi %arg0, %31 : i32
    %c0_i32_17 = arith.constant 0 : i32
    %33 = arith.cmpi ne, %32, %c0_i32_17 : i32
    %c0_i32_18 = arith.constant 0 : i32
    %34 = arith.cmpi slt, %32, %c0_i32_18 : i32
    %c0_i32_19 = arith.constant 0 : i32
    %35 = arith.cmpi slt, %31, %c0_i32_19 : i32
    %36 = arith.xori %34, %35 : i1
    %37 = arith.andi %36, %33 : i1
    %38 = arith.addi %32, %31 : i32
    %39 = arith.select %37, %38, %32 : i32
    %40 = tpu.iota {dimensions = array<i32: 0>} : vector<10x1xi32>
    %c0_i32_20 = arith.constant 0 : i32
    %41 = vector.broadcast %c0_i32_20 : i32 to vector<10x1xi32>
    %42 = arith.cmpi eq, %40, %41 : vector<10x1xi32>
    %c0_i32_21 = arith.constant 0 : i32
    %43 = arith.cmpi eq, %39, %c0_i32_21 : i32
    %44 = vector.broadcast %43 : i1 to vector<10x1xi1>
    %45 = arith.andi %42, %44 : vector<10x1xi1>
    %c9_i32 = arith.constant 9 : i32
    %46 = vector.broadcast %c9_i32 : i32 to vector<10x1xi32>
    %47 = arith.cmpi eq, %40, %46 : vector<10x1xi32>
    %c1_i32_22 = arith.constant 1 : i32
    %48 = arith.cmpi eq, %39, %c1_i32_22 : i32
    %49 = vector.broadcast %48 : i1 to vector<10x1xi1>
    %50 = arith.andi %47, %49 : vector<10x1xi1>
    %51 = arith.ori %45, %50 : vector<10x1xi1>
    %cst_23 = arith.constant 0.000000e+00 : f32
    %52 = vector.shape_cast %51 : vector<10x1xi1> to vector<10x1xi1>
    %53 = vector.broadcast %52 : vector<10x1xi1> to vector<10x128xi1>
    %54 = vector.broadcast %cst_23 : f32 to vector<10x128xf32>
    %55 = arith.select %53, %54, %29 : vector<10x128xi1>, vector<10x128xf32>
    %56 = arith.truncf %55 : vector<10x128xf32> to vector<10x128xbf16>
    %cst_24 = arith.constant 0.000000e+00 : f32
    %57 = vector.broadcast %cst_24 : f32 to vector<8x128xf32>
    %58 = vector.extract_strided_slice %56 {offsets = [0, 0], sizes = [8, 128], strides = [1, 1]} : vector<10x128xbf16> to vector<8x128xbf16>
    %c0_25 = arith.constant 0 : index
    %c0_26 = arith.constant 0 : index
    %c0_27 = arith.constant 0 : index
    %59 = vector.load %arg3[%c0_25, %c0_26, %c0_27] : memref<3x128x128xbf16, #tpu.memory_space<vmem>>, vector<1x128x128xbf16>
    %60 = vector.shape_cast %59 : vector<1x128x128xbf16> to vector<128x128xbf16>
    %cst_28 = arith.constant dense<0.000000e+00> : vector<8x128xf32>
    %61 = tpu.matmul %58, %60, %cst_28 {dimension_numbers = #tpu.dot_dimension_numbers<[1], [0], [0], [1], [0, 0, 1, 1], [], []>} : vector<8x128xbf16>, vector<128x128xbf16>, vector<8x128xf32> -> vector<8x128xf32>
    %62 = arith.addf %57, %61 : vector<8x128xf32>
    %63 = vector.extract_strided_slice %56 {offsets = [1, 0], sizes = [8, 128], strides = [1, 1]} : vector<10x128xbf16> to vector<8x128xbf16>
    %c1_29 = arith.constant 1 : index
    %c0_30 = arith.constant 0 : index
    %c0_31 = arith.constant 0 : index
    %64 = vector.load %arg3[%c1_29, %c0_30, %c0_31] : memref<3x128x128xbf16, #tpu.memory_space<vmem>>, vector<1x128x128xbf16>
    %65 = vector.shape_cast %64 : vector<1x128x128xbf16> to vector<128x128xbf16>
    %cst_32 = arith.constant dense<0.000000e+00> : vector<8x128xf32>
    %66 = tpu.matmul %63, %65, %cst_32 {dimension_numbers = #tpu.dot_dimension_numbers<[1], [0], [0], [1], [0, 0, 1, 1], [], []>} : vector<8x128xbf16>, vector<128x128xbf16>, vector<8x128xf32> -> vector<8x128xf32>
    %67 = arith.addf %62, %66 : vector<8x128xf32>
    %68 = vector.extract_strided_slice %56 {offsets = [2, 0], sizes = [8, 128], strides = [1, 1]} : vector<10x128xbf16> to vector<8x128xbf16>
    %c2_33 = arith.constant 2 : index
    %c0_34 = arith.constant 0 : index
    %c0_35 = arith.constant 0 : index
    %69 = vector.load %arg3[%c2_33, %c0_34, %c0_35] : memref<3x128x128xbf16, #tpu.memory_space<vmem>>, vector<1x128x128xbf16>
    %70 = vector.shape_cast %69 : vector<1x128x128xbf16> to vector<128x128xbf16>
    %cst_36 = arith.constant dense<0.000000e+00> : vector<8x128xf32>
    %71 = tpu.matmul %68, %70, %cst_36 {dimension_numbers = #tpu.dot_dimension_numbers<[1], [0], [0], [1], [0, 0, 1, 1], [], []>} : vector<8x128xbf16>, vector<128x128xbf16>, vector<8x128xf32> -> vector<8x128xf32>
    %72 = arith.addf %67, %71 : vector<8x128xf32>
    %c0_37 = arith.constant 0 : index
    %c0_38 = arith.constant 0 : index
    %73 = vector.load %arg6[%c0_37, %c0_38] : memref<1x128xf32, #tpu.memory_space<vmem>>, vector<1x128xf32>
    %74 = vector.broadcast %73 : vector<1x128xf32> to vector<8x128xf32>
    %75 = arith.mulf %72, %74 : vector<8x128xf32>
    %c0_39 = arith.constant 0 : index
    %c0_40 = arith.constant 0 : index
    %76 = vector.load %arg7[%c0_39, %c0_40] : memref<1x128xf32, #tpu.memory_space<vmem>>, vector<1x128xf32>
    %77 = vector.broadcast %76 : vector<1x128xf32> to vector<8x128xf32>
    %78 = arith.addf %75, %77 : vector<8x128xf32>
    %79 = arith.negf %78 : vector<8x128xf32>
    %80 = math.exp %79 : vector<8x128xf32>
    %cst_41 = arith.constant 1.000000e+00 : f32
    %81 = vector.broadcast %cst_41 : f32 to vector<8x128xf32>
    %82 = arith.addf %81, %80 : vector<8x128xf32>
    %83 = arith.divf %81, %82 : vector<8x128xf32>
    %84 = arith.mulf %78, %83 : vector<8x128xf32>
    %85 = vector.extract_strided_slice %1 {offsets = [2, 0], sizes = [8, 128], strides = [1, 1]} : vector<12x128xbf16> to vector<8x128xbf16>
    %86 = arith.extf %85 : vector<8x128xbf16> to vector<8x128xf32>
    %87 = arith.addf %84, %86 : vector<8x128xf32>
    %c0_42 = arith.constant 0 : index
    %c0_43 = arith.constant 0 : index
    %c0_44 = arith.constant 0 : index
    %88 = vector.load %arg8[%c0_42, %c0_43, %c0_44] : memref<1x8x128xf32, #tpu.memory_space<vmem>>, vector<1x8x128xf32>
    %89 = vector.shape_cast %88 : vector<1x8x128xf32> to vector<8x128xf32>
    %90 = vector.shape_cast %87 : vector<8x128xf32> to vector<1x8x128xf32>
    tpu.vector_store %arg8[%c0_42, %c0_43, %c0_44], %90 {strides = array<i32>} : memref<1x8x128xf32, #tpu.memory_space<vmem>>, vector<1x8x128xf32>,
    return
  }
  func.func @transform_0(%arg0: i32) -> (i32, i32, i32) {
    %c0_i32 = arith.constant 0 : i32
    %c0_i32_0 = arith.constant 0 : i32
    %c0_i32_1 = arith.constant 0 : i32
    return %arg0, %c0_i32, %c0_i32_0 : i32, i32, i32
  }
  func.func @transform_1(%arg0: i32) -> (i32, i32, i32) {
    %c0_i32 = arith.constant 0 : i32
    %c0_i32_0 = arith.constant 0 : i32
    %c0_i32_1 = arith.constant 0 : i32
    %c0_i32_2 = arith.constant 0 : i32
    return %c0_i32, %c0_i32_0, %c0_i32_1 : i32, i32, i32
  }
  func.func @transform_2(%arg0: i32) -> (i32, i32, i32) {
    %c0_i32 = arith.constant 0 : i32
    %c0_i32_0 = arith.constant 0 : i32
    %c0_i32_1 = arith.constant 0 : i32
    %c0_i32_2 = arith.constant 0 : i32
    return %c0_i32, %c0_i32_0, %c0_i32_1 : i32, i32, i32
  }
  func.func @transform_3(%arg0: i32) -> (i32, i32) {
    %c0_i32 = arith.constant 0 : i32
    %c0_i32_0 = arith.constant 0 : i32
    %c0_i32_1 = arith.constant 0 : i32
    return %c0_i32, %c0_i32_0 : i32, i32
  }
  func.func @transform_4(%arg0: i32) -> (i32, i32) {
    %c0_i32 = arith.constant 0 : i32
    %c0_i32_0 = arith.constant 0 : i32
    %c0_i32_1 = arith.constant 0 : i32
    return %c0_i32, %c0_i32_0 : i32, i32
  }
  func.func @transform_5(%arg0: i32) -> (i32, i32) {
    %c0_i32 = arith.constant 0 : i32
    %c0_i32_0 = arith.constant 0 : i32
    %c0_i32_1 = arith.constant 0 : i32
    return %c0_i32, %c0_i32_0 : i32, i32
  }
  func.func @transform_6(%arg0: i32) -> (i32, i32) {
    %c0_i32 = arith.constant 0 : i32
    %c0_i32_0 = arith.constant 0 : i32
    %c0_i32_1 = arith.constant 0 : i32
    return %c0_i32, %c0_i32_0 : i32, i32
  }
  func.func @transform_7(%arg0: i32) -> (i32, i32, i32) {
    %c0_i32 = arith.constant 0 : i32
    %c0_i32_0 = arith.constant 0 : i32
    %c0_i32_1 = arith.constant 0 : i32
    return %arg0, %c0_i32, %c0_i32_0 : i32, i32, i32
  }
}

</mosaic_0001>

<bundles_post_ra>
// kernel: tile.33
= control target key start
LH: loop header
LB: loop body
LE: loop exit
PB: predicated region body
PF: predicated region fallthrough
CT: control target
= control target key end

     0   :  { %s28_s0 = inlined_call_operand.vmem [shape: f32[4], index: 0, kind: input, shape index: {}]   ;;  %s29_s1 = inlined_call_operand.vmem [shape: f32[16,4], index: 1, kind: output, shape index: {}]  }
   0x1   :  { %v4_v0 = vld [vmem:[%s28_s0] ss:$0 sm:$0xff] }
   0x2   :  { %5 = vst [vmem:[%s29_s1] sm:$0xff] %v4_v0  ;;  %8 = vst [vmem:[%s29_s1 + $0x8] sm:$0xff] %v4_v0 }

// kernel: tile.34
= control target key start
LH: loop header
LB: loop body
LE: loop exit
PB: predicated region body
PF: predicated region fallthrough
CT: control target
= control target key end

     0   :  { %s131_s10 = smov 60   ;;  %s132_s11 = smov 52   ;;  %vm3_vm0 = vcmask 31744   ;;  %vm9_vm1 = vcmask 523744   ;;  %vm15_vm2 = vcmask 490944   ;;  %vm21_vm3 = vcmask 458144   ;;  %s207_s0 = inlined_call_operand.vmem [shape: f32[16,4], index: 0, kind: input, shape index: {}]   ;;  %s208_s1 = inlined_call_operand.vmem [shape: f32[64], index: 1, kind: output, shape index: {}]  }
   0x1   :  { %v101_v0 = vld [vmem:[%s207_s0 + $0xf] sm:$0x1]   ;;  %v103_v1 = vld [vmem:[%s207_s0 + $0xd] sm:$0x1]   ;;  %v102_v2 = vld [vmem:[%s207_s0 + $0xe] sm:$0x1]  }
   0x2   :  { %7 = vrot.lane.b32.xlu0 %v101_v0, %s131_s10  ;;  %19 = vrot.lane.b32.xlu1 %v103_v1, %s132_s11  ;;  %v104_v3 = vld [vmem:[%s207_s0 + $0xc] sm:$0x1]   ;;  %s133_s16 = smov 56   ;;  %s134_s17 = smov 48   ;;  %v105_v4 = vld [vmem:[%s207_s0 + $0xb] sm:$0x1]  }
   0x3   :  { %v106_v5 = vld [vmem:[%s207_s0 + $0xa] sm:$0x1]   ;;  %v2_v6 = vld [vmem:[%s207_s0] sm:$0x1]   ;;  %s135_s24 = smov 44   ;;  %s136_s25 = smov 40  }
   0x4   :  { %4 = vst.msk [vmem:[#allocation0] sm:$0x1] %vm3_vm0, %v2_v6   ;;  %v107_v7 = vld [vmem:[%s207_s0 + $0x9] sm:$0x1]   ;;  %v108_v8 = vld [vmem:[%s207_s0 + $0x8] sm:$0x1]  }
   0x5   :  { %s137_s30 = smov 36   ;;  %s138_s2 = smov 32   ;;  %v109_v9 = vld [vmem:[%s207_s0 + $0x7] sm:$0x1]   ;;  %v110_v10 = vld [vmem:[%s207_s0 + $0x6] sm:$0x1]  }
   0x6   :  { %13 = vrot.lane.b32.xlu0 %v102_v2, %s133_s16  ;;  %25 = vrot.lane.b32.xlu1 %v104_v3, %s134_s17  ;;  %s139_s7 = smov 28   ;;  %s140_s8 = smov 24   ;;  %v111_v11 = vld [vmem:[%s207_s0 + $0x5] sm:$0x1]   ;;  %v112_v12 = vld [vmem:[%s207_s0 + $0x4] sm:$0x1]  }
   0x7   :  { %s141_s13 = smov 20   ;;  %s142_s14 = smov 16   ;;  %v113_v13 = vld [vmem:[%s207_s0 + $0x3] sm:$0x1]   ;;  %v114_v14 = vld [vmem:[%s207_s0 + $0x2] sm:$0x1]  }
   0x8   :  { %s143_s19 = smov 12   ;;  %s144_s20 = smov 8   ;;  %v115_v15 = vld [vmem:[%s207_s0 + $0x1] sm:$0x1]   ;;  %vm27_vm4 = vcmask 425344   ;;  %vm33_vm5 = vcmask 392544  }
   0x9   :  { %s145_s0 = smov 4   ;;  %vm39_vm6 = vcmask 359744   ;;  %vm45_vm7 = vcmask 326944   ;;  %vm51_vm8 = vcmask 294144   ;;  %vm57_vm9 = vcmask 261344  }
   0xa   :  { %31 = vrot.lane.b32.xlu0 %v105_v4, %s135_s24  ;;  %37 = vrot.lane.b32.xlu1 %v106_v5, %s136_s25  ;;  %vm63_vm10 = vcmask 228544   ;;  %vm69_vm11 = vcmask 195744   ;;  %vm75_vm12 = vcmask 162944   ;;  %vm81_vm13 = vcmask 130144  }
   0xb   :  { %vm87_vm14 = vcmask 97344   ;;  %vm93_vm15 = vcmask 64544  }
   0xe   :  { %43 = vrot.lane.b32.xlu0 %v107_v7, %s137_s30  ;;  %49 = vrot.lane.b32.xlu1 %v108_v8, %s138_s2 }
  0x12   :  { %55 = vrot.lane.b32.xlu0 %v109_v9, %s139_s7  ;;  %61 = vrot.lane.b32.xlu1 %v110_v10, %s140_s8 }
  0x16   :  { %67 = vrot.lane.b32.xlu0 %v111_v11, %s141_s13  ;;  %73 = vrot.lane.b32.xlu1 %v112_v12, %s142_s14 }
  0x1a   :  { %79 = vrot.lane.b32.xlu0 %v113_v13, %s143_s19  ;;  %85 = vrot.lane.b32.xlu1 %v114_v14, %s144_s20 }
  0x1e   :  { %91 = vrot.lane.b32.xlu0 %v115_v15, %s145_s0 }
  0x74   :  { %v8_v16 = vpop.permute.xlu0 %7   ;;  %v20_v17 = vpop.permute.xlu1 %19  }
  0x75   :  { %10 = vst.msk [vmem:[#allocation0] sm:$0x1] %vm9_vm1, %v8_v16  }
  0x78   :  { %v14_v18 = vpop.permute.xlu0 %13   ;;  %v26_v19 = vpop.permute.xlu1 %25  }
  0x79   :  { %16 = vst.msk [vmem:[#allocation0] sm:$0x1] %vm15_vm2, %v14_v18  }
  0x7a   :  { %22 = vst.msk [vmem:[#allocation0] sm:$0x1] %vm21_vm3, %v20_v17  }
  0x7b   :  { %28 = vst.msk [vmem:[#allocation0] sm:$0x1] %vm27_vm4, %v26_v19  }
  0x7c   :  { %v32_v20 = vpop.permute.xlu0 %31   ;;  %v38_v21 = vpop.permute.xlu1 %37  }
  0x7d   :  { %34 = vst.msk [vmem:[#allocation0] sm:$0x1] %vm33_vm5, %v32_v20  }
  0x7e   :  { %40 = vst.msk [vmem:[#allocation0] sm:$0x1] %vm39_vm6, %v38_v21  }
  0x80   :  { %v44_v22 = vpop.permute.xlu0 %43   ;;  %v50_v23 = vpop.permute.xlu1 %49  }
  0x81   :  { %46 = vst.msk [vmem:[#allocation0] sm:$0x1] %vm45_vm7, %v44_v22  }
  0x82   :  { %52 = vst.msk [vmem:[#allocation0] sm:$0x1] %vm51_vm8, %v50_v23  }
  0x84   :  { %v56_v24 = vpop.permute.xlu0 %55   ;;  %v62_v25 = vpop.permute.xlu1 %61  }
  0x85   :  { %58 = vst.msk [vmem:[#allocation0] sm:$0x1] %vm57_vm9, %v56_v24  }
  0x86   :  { %64 = vst.msk [vmem:[#allocation0] sm:$0x1] %vm63_vm10, %v62_v25  }
  0x88   :  { %v68_v26 = vpop.permute.xlu0 %67   ;;  %v74_v27 = vpop.permute.xlu1 %73  }
  0x89   :  { %70 = vst.msk [vmem:[#allocation0] sm:$0x1] %vm69_vm11, %v68_v26  }
  0x8a   :  { %76 = vst.msk [vmem:[#allocation0] sm:$0x1] %vm75_vm12, %v74_v27  }
  0x8c   :  { %v80_v28 = vpop.permute.xlu0 %79   ;;  %v86_v29 = vpop.permute.xlu1 %85  }
  0x8d   :  { %82 = vst.msk [vmem:[#allocation0] sm:$0x1] %vm81_vm13, %v80_v28  }
  0x8e   :  { %88 = vst.msk [vmem:[#allocation0] sm:$0x1] %vm87_vm14, %v86_v29  }
  0x90   :  { %v92_v30 = vpop.permute.xlu0 %91  }
  0x91   :  { %94 = vst.msk [vmem:[#allocation0] sm:$0x1] %vm93_vm15, %v92_v30  }
  0x98   :  { %v98_v31 = vld [vmem:[#allocation0] sm:$0x1] }
  0x99   :  { %100 = vst [vmem:[%s208_s1] sm:$0x1] %v98_v31 }

// kernel: tile.23
= control target key start
LH: loop header
LB: loop body
LE: loop exit
PB: predicated region body
PF: predicated region fallthrough
CT: control target
= control target key end

     0   :  { %s28_s0 = inlined_call_operand.vmem [shape: f32[2], index: 0, kind: input, shape index: {}]   ;;  %s29_s1 = inlined_call_operand.vmem [shape: f32[16,2], index: 1, kind: output, shape index: {}]  }
   0x1   :  { %v4_v0 = vld [vmem:[%s28_s0] ss:$0 sm:$0xff] }
   0x2   :  { %5 = vst [vmem:[%s29_s1] sm:$0xff] %v4_v0  ;;  %8 = vst [vmem:[%s29_s1 + $0x8] sm:$0xff] %v4_v0 }

// kernel: tile.24
= control target key start
LH: loop header
LB: loop body
LE: loop exit
PB: predicated region body
PF: predicated region fallthrough
CT: control target
= control target key end

     0   :  { %s131_s10 = smov 30   ;;  %s132_s11 = smov 26   ;;  %vm3_vm0 = vcmask 15360   ;;  %vm9_vm1 = vcmask 261360   ;;  %vm15_vm2 = vcmask 244960   ;;  %vm21_vm3 = vcmask 228560   ;;  %s207_s0 = inlined_call_operand.vmem [shape: f32[16,2], index: 0, kind: input, shape index: {}]   ;;  %s208_s1 = inlined_call_operand.vmem [shape: f32[32], index: 1, kind: output, shape index: {}]  }
   0x1   :  { %v101_v0 = vld [vmem:[%s207_s0 + $0xf] sm:$0x1]   ;;  %v103_v1 = vld [vmem:[%s207_s0 + $0xd] sm:$0x1]   ;;  %v102_v2 = vld [vmem:[%s207_s0 + $0xe] sm:$0x1]  }
   0x2   :  { %7 = vrot.lane.b32.xlu0 %v101_v0, %s131_s10  ;;  %19 = vrot.lane.b32.xlu1 %v103_v1, %s132_s11  ;;  %v104_v3 = vld [vmem:[%s207_s0 + $0xc] sm:$0x1]   ;;  %s133_s16 = smov 28   ;;  %s134_s17 = smov 24   ;;  %v105_v4 = vld [vmem:[%s207_s0 + $0xb] sm:$0x1]  }
   0x3   :  { %v106_v5 = vld [vmem:[%s207_s0 + $0xa] sm:$0x1]   ;;  %v2_v6 = vld [vmem:[%s207_s0] sm:$0x1]   ;;  %s135_s24 = smov 22   ;;  %s136_s25 = smov 20  }
   0x4   :  { %4 = vst.msk [vmem:[#allocation0] sm:$0x1] %vm3_vm0, %v2_v6   ;;  %v107_v7 = vld [vmem:[%s207_s0 + $0x9] sm:$0x1]   ;;  %v108_v8 = vld [vmem:[%s207_s0 + $0x8] sm:$0x1]  }
   0x5   :  { %s137_s30 = smov 18   ;;  %s138_s2 = smov 16   ;;  %v109_v9 = vld [vmem:[%s207_s0 + $0x7] sm:$0x1]   ;;  %v110_v10 = vld [vmem:[%s207_s0 + $0x6] sm:$0x1]  }
   0x6   :  { %13 = vrot.lane.b32.xlu0 %v102_v2, %s133_s16  ;;  %25 = vrot.lane.b32.xlu1 %v104_v3, %s134_s17  ;;  %s139_s7 = smov 14   ;;  %s140_s8 = smov 12   ;;  %v111_v11 = vld [vmem:[%s207_s0 + $0x5] sm:$0x1]   ;;  %v112_v12 = vld [vmem:[%s207_s0 + $0x4] sm:$0x1]  }
   0x7   :  { %s141_s13 = smov 10   ;;  %s142_s14 = smov 8   ;;  %v113_v13 = vld [vmem:[%s207_s0 + $0x3] sm:$0x1]   ;;  %v114_v14 = vld [vmem:[%s207_s0 + $0x2] sm:$0x1]  }
   0x8   :  { %s143_s19 = smov 6   ;;  %s144_s20 = smov 4   ;;  %v115_v15 = vld [vmem:[%s207_s0 + $0x1] sm:$0x1]   ;;  %vm27_vm4 = vcmask 212160   ;;  %vm33_vm5 = vcmask 195760  }
   0x9   :  { %s145_s0 = smov 2   ;;  %vm39_vm6 = vcmask 179360   ;;  %vm45_vm7 = vcmask 162960   ;;  %vm51_vm8 = vcmask 146560   ;;  %vm57_vm9 = vcmask 130160  }
   0xa   :  { %31 = vrot.lane.b32.xlu0 %v105_v4, %s135_s24  ;;  %37 = vrot.lane.b32.xlu1 %v106_v5, %s136_s25  ;;  %vm63_vm10 = vcmask 113760   ;;  %vm69_vm11 = vcmask 97360   ;;  %vm75_vm12 = vcmask 80960   ;;  %vm81_vm13 = vcmask 64560  }
   0xb   :  { %vm87_vm14 = vcmask 48160   ;;  %vm93_vm15 = vcmask 31760  }
   0xe   :  { %43 = vrot.lane.b32.xlu0 %v107_v7, %s137_s30  ;;  %49 = vrot.lane.b32.xlu1 %v108_v8, %s138_s2 }
  0x12   :  { %55 = vrot.lane.b32.xlu0 %v109_v9, %s139_s7  ;;  %61 = vrot.lane.b32.xlu1 %v110_v10, %s140_s8 }
  0x16   :  { %67 = vrot.lane.b32.xlu0 %v111_v11, %s141_s13  ;;  %73 = vrot.lane.b32.xlu1 %v112_v12, %s142_s14 }
  0x1a   :  { %79 = vrot.lane.b32.xlu0 %v113_v13, %s143_s19  ;;  %85 = vrot.lane.b32.xlu1 %v114_v14, %s144_s20 }
  0x1e   :  { %91 = vrot.lane.b32.xlu0 %v115_v15, %s145_s0 }
  0x74   :  { %v8_v16 = vpop.permute.xlu0 %7   ;;  %v20_v17 = vpop.permute.xlu1 %19  }
  0x75   :  { %10 = vst.msk [vmem:[#allocation0] sm:$0x1] %vm9_vm1, %v8_v16  }
  0x78   :  { %v14_v18 = vpop.permute.xlu0 %13   ;;  %v26_v19 = vpop.permute.xlu1 %25  }
  0x79   :  { %16 = vst.msk [vmem:[#allocation0] sm:$0x1] %vm15_vm2, %v14_v18  }
  0x7a   :  { %22 = vst.msk [vmem:[#allocation0] sm:$0x1] %vm21_vm3, %v20_v17  }
  0x7b   :  { %28 = vst.msk [vmem:[#allocation0] sm:$0x1] %vm27_vm4, %v26_v19  }
  0x7c   :  { %v32_v20 = vpop.permute.xlu0 %31   ;;  %v38_v21 = vpop.permute.xlu1 %37  }
  0x7d   :  { %34 = vst.msk [vmem:[#allocation0] sm:$0x1] %vm33_vm5, %v32_v20  }
  0x7e   :  { %40 = vst.msk [vmem:[#allocation0] sm:$0x1] %vm39_vm6, %v38_v21  }
  0x80   :  { %v44_v22 = vpop.permute.xlu0 %43   ;;  %v50_v23 = vpop.permute.xlu1 %49  }
  0x81   :  { %46 = vst.msk [vmem:[#allocation0] sm:$0x1] %vm45_vm7, %v44_v22  }
  0x82   :  { %52 = vst.msk [vmem:[#allocation0] sm:$0x1] %vm51_vm8, %v50_v23  }
  0x84   :  { %v56_v24 = vpop.permute.xlu0 %55   ;;  %v62_v25 = vpop.permute.xlu1 %61  }
  0x85   :  { %58 = vst.msk [vmem:[#allocation0] sm:$0x1] %vm57_vm9, %v56_v24  }
  0x86   :  { %64 = vst.msk [vmem:[#allocation0] sm:$0x1] %vm63_vm10, %v62_v25  }
  0x88   :  { %v68_v26 = vpop.permute.xlu0 %67   ;;  %v74_v27 = vpop.permute.xlu1 %73  }
  0x89   :  { %70 = vst.msk [vmem:[#allocation0] sm:$0x1] %vm69_vm11, %v68_v26  }
  0x8a   :  { %76 = vst.msk [vmem:[#allocation0] sm:$0x1] %vm75_vm12, %v74_v27  }
  0x8c   :  { %v80_v28 = vpop.permute.xlu0 %79   ;;  %v86_v29 = vpop.permute.xlu1 %85  }
  0x8d   :  { %82 = vst.msk [vmem:[#allocation0] sm:$0x1] %vm81_vm13, %v80_v28  }
  0x8e   :  { %88 = vst.msk [vmem:[#allocation0] sm:$0x1] %vm87_vm14, %v86_v29  }
  0x90   :  { %v92_v30 = vpop.permute.xlu0 %91  }
  0x91   :  { %94 = vst.msk [vmem:[#allocation0] sm:$0x1] %vm93_vm15, %v92_v30  }
  0x98   :  { %v98_v31 = vld [vmem:[#allocation0] sm:$0x1] }
  0x99   :  { %100 = vst [vmem:[%s208_s1] sm:$0x1] %v98_v31 }

// kernel: _lambda_.1
= control target key start
LH: loop header
LB: loop body
LE: loop exit
PB: predicated region body
PF: predicated region fallthrough
CT: control target
= control target key end

     0   :  { %s1550_s24 = smov 0   ;;  %s1827_s0 = inlined_call_operand.vmem [shape: bf16[4,12,128], index: 0, kind: input, shape index: {}]   ;;  %s1828_s1 = inlined_call_operand.vmem [shape: bf16[3,128,128], index: 1, kind: input, shape index: {}]   ;;  %s1829_s2 = inlined_call_operand.vmem [shape: bf16[3,128,128], index: 2, kind: input, shape index: {}]   ;;  %s1830_s3 = inlined_call_operand.vmem [shape: f32[1,128], index: 3, kind: input, shape index: {}]   ;;  %s1831_s4 = inlined_call_operand.vmem [shape: f32[1,128], index: 4, kind: input, shape index: {}]   ;;  %s1832_s5 = inlined_call_operand.vmem [shape: f32[1,128], index: 5, kind: input, shape index: {}]   ;;  %s1833_s6 = inlined_call_operand.vmem [shape: f32[1,128], index: 6, kind: input, shape index: {}]   ;;  %s1834_s7 = inlined_call_operand.vmem [shape: f32[4,8,128], index: 7, kind: output, shape index: {}]  }
   0x1 LB: > { %s1556_s25 = sadd.s32 4294967295, %s1506_s24   ;;  %p1104_p0 = scmp.ge.s32.totalorder %s1506_s24, 1  ;;  %s1506_s24 = sphi %s1550_s24, %s17_s24  }
   0x2   : > { %p237_p1 = scmp.lt.s32.totalorder %s1506_s24, 5 }
   0x4   : > { %p238_p2 = pnand %p1104_p0, %p237_p1 }
   0x5   : > { %v1439_v0 = vld [vmem:[%s1828_s1 + $0x40] sm:$0xff] (!%p238_p2)   ;;  %v1508_v1 = vmov (!%p238_p2), 0.0   ;;  %v1440_v2 = vld [vmem:[%s1828_s1 + $0x48] sm:$0xff] (!%p238_p2)   ;;  %vm1509_vm0 = vmmov (!%p238_p2), 0   ;;  %p268_p3 = scmp.lt.s32.totalorder (!%p238_p2), %s1556_s25, 3  ;;  %v1441_v3 = vld [vmem:[%s1828_s1 + $0x50] sm:$0xff] (!%p238_p2)   ;;  %v659_v54 = vlaneseq (!%p238_p2) }
   0x6   : > { %241 = sbr.rel (%p238_p2) target bundleno = 668 (0x29c), region = 48  ;;  %1293 = vmatprep.subr.bf16.mxu0 (!%p238_p2), %v1508_v1  ;;  %1353 = vmatprep.subr.bf16.mxu1 (!%p238_p2), %v1508_v1  ;;  %v1442_v4 = vld [vmem:[%s1828_s1 + $0x58] sm:$0xff] (!%p238_p2)   ;;  %v1443_v7 = vld [vmem:[%s1828_s1 + $0x60] sm:$0xff] (!%p238_p2)   ;;  %v1444_v9 = vld [vmem:[%s1828_s1 + $0x68] sm:$0xff] (!%p238_p2)   ;;  %s648_s15 = ssub.s32 (!%p238_p2), 0, %s1556_s25  ;;  %vm1040_vm10 = vcmask (!%p238_p2), 1045504  }
   0x7   : > { %1294 = vmatpush3.bf16.msra.mxu0 (!%p238_p2), %v1439_v0  ;;  %1309 = vmatprep.mubr.msk.bf16.mxu0 (!%p238_p2), %vm1509_vm0, %v1508_v1  ;;  %v1445_v11 = vld [vmem:[%s1828_s1 + $0x70] sm:$0xff] (!%p238_p2)   ;;  %v1446_v12 = vld [vmem:[%s1828_s1 + $0x78] sm:$0xff] (!%p238_p2)   ;;  %v1448_v15 = vld [vmem:[%s1828_s1] sm:$0xff] (!%p238_p2)   ;;  %s1169_s16 = smin.u32 (!%p238_p2), %s1556_s25, %s648_s15  ;;  %p647_p4 = scmp.lt.s32.totalorder (!%p238_p2), %s1556_s25, 0  ;;  %v660_v58 = vshrl.u32 (!%p238_p2), %v659_v54, 7 }
   0x8   : > { %1295 = vmatprep.subr.bf16.mxu0 (!%p238_p2), %v1508_v1  ;;  %1369 = vmatprep.mubr.msk.bf16.mxu1 (!%p238_p2), %vm1509_vm0, %v1508_v1  ;;  %v1449_v17 = vld [vmem:[%s1828_s1 + $0x8] sm:$0xff] (!%p238_p2)   ;;  %v1450_v18 = vld [vmem:[%s1828_s1 + $0x10] sm:$0xff] (!%p238_p2)   ;;  %v1451_v19 = vld [vmem:[%s1828_s1 + $0x18] sm:$0xff] (!%p238_p2)   ;;  %s650_s19 = sand.u32 (!%p238_p2), 1, %s1169_s16  }
   0x9   : > { %v1452_v20 = vld [vmem:[%s1828_s1 + $0x20] sm:$0xff] (!%p238_p2)   ;;  %v1453_v21 = vld [vmem:[%s1828_s1 + $0x28] sm:$0xff] (!%p238_p2)   ;;  %v1454_v22 = vld [vmem:[%s1828_s1 + $0x30] sm:$0xff] (!%p238_p2)   ;;  %s651_s22 = ssub.s32 (!%p238_p2), 0, %s650_s19  ;;  %v661_v60 = vadd.s32 (!%p238_p2), 8, %v660_v58  ;;  %vm662_vm1 = vcmp.eq.s32.totalorder (!%p238_p2), %v660_v58, 0 }
   0xa   : > { %v1455_v23 = vld [vmem:[%s1828_s1 + $0x38] sm:$0xff] (!%p238_p2)   ;;  %v1456_v24 = vld [vmem:[%s1828_s1 + $0x80] sm:$0xff] (!%p238_p2)   ;;  %v1457_v25 = vld [vmem:[%s1828_s1 + $0x88] sm:$0xff] (!%p238_p2)  }
   0xb   : > { %1296 = vmatpush3.bf16.msra.mxu0 (!%p238_p2), %v1440_v2  ;;  %v1458_v26 = vld [vmem:[%s1828_s1 + $0x90] sm:$0xff] (!%p238_p2)   ;;  %v1459_v27 = vld [vmem:[%s1828_s1 + $0x98] sm:$0xff] (!%p238_p2)   ;;  %v1460_v28 = vld [vmem:[%s1828_s1 + $0xa0] sm:$0xff] (!%p238_p2)   ;;  %vm671_vm3 = vcmp.eq.s32.totalorder (!%p238_p2), %v661_v60, 9 }
   0xc   : > { %1297 = vmatprep.subr.bf16.mxu0 (!%p238_p2), %v1508_v1  ;;  %v1461_v29 = vld [vmem:[%s1828_s1 + $0xa8] sm:$0xff] (!%p238_p2)   ;;  %v1462_v30 = vld [vmem:[%s1828_s1 + $0xb0] sm:$0xff] (!%p238_p2)   ;;  %v1463_v31 = vld [vmem:[%s1828_s1 + $0xb8] sm:$0xff] (!%p238_p2)  }
   0xd   : > { %s1575_s30 = scalar_select %p268_p3, %s1556_s25, 3  ;;  %v1464_v33 = vld [vmem:[%s1829_s2 + $0x40] sm:$0xff]   ;;  %v1465_v34 = vld [vmem:[%s1829_s2 + $0x48] sm:$0xff]   ;;  %v1466_v35 = vld [vmem:[%s1829_s2 + $0x50] sm:$0xff]  }
   0xe   : > { %1354 = vmatpush3.bf16.msra.mxu1 %v1464_v33  ;;  %v1467_v36 = vld [vmem:[%s1829_s2 + $0x58] sm:$0xff]   ;;  %v1468_v37 = vld [vmem:[%s1829_s2 + $0x60] sm:$0xff]   ;;  %v1469_v38 = vld [vmem:[%s1829_s2 + $0x68] sm:$0xff]   ;;  %s1840_s22 = smov (!%p647_p4, %s651_s22), %s650_s19 }
   0xf   : > { %s1238_s10 = sshll.u32 %s1575_s30, 3  ;;  %1298 = vmatpush3.bf16.msra.mxu0 %v1441_v3  ;;  %1355 = vmatprep.subr.bf16.mxu1 %v1508_v1  ;;  %v1470_v39 = vld [vmem:[%s1829_s2 + $0x70] sm:$0xff]   ;;  %v1471_v40 = vld [vmem:[%s1829_s2 + $0x78] sm:$0xff]   ;;  %v1165_v41 = vld [vmem:[%s1830_s3] ss:$0 sm:$0xff]  ;;  %p1171_p5 = scmp.lt.s32.totalorder %s1840_s22, 0 }
  0x10   : > { %s272_s13 = scalar_lea.vmem %s1827_s0, %s1238_s10  ;;  %1299 = vmatprep.subr.bf16.mxu0 %v1508_v1  ;;  %v1166_v43 = vld [vmem:[%s1831_s4] ss:$0 sm:$0xff]  ;;  %s657_s23 = sadd.s32 2, %s1840_s22 }
  0x11   : > { %v1591_v5 = vld [vmem:[%s272_s13] sm:$0xf]  ;;  %v1593_v6 = vld [vmem:[%s272_s13 + $0x4] sm:$0x3]  ;;  %s1842_s23 = smov (!%p1171_p5, %s657_s23), %s1840_s22 }
  0x12   : > { %v1601_v8 = vcombine.low %v1591_v5, %v1593_v6  ;;  %1356 = vmatpush3.bf16.msra.mxu1 %v1465_v34  ;;  %p664_p6 = scmp.eq.s32.totalorder %s1842_s23, 0  ;;  %p672_p7 = scmp.eq.s32.totalorder %s1842_s23, 1  ;;  %v1234_v34 = vld [vmem:[%s1833_s6] ss:$0 sm:$0xff] }
  0x13   : > { %1300 = vmatpush3.bf16.msra.mxu0 %v1442_v4  ;;  %1357 = vmatprep.subr.bf16.mxu1 %v1508_v1 }
  0x14   : > { %1301 = vmatprep.subr.bf16.mxu0 %v1508_v1  ;;  %v321_v10 = vshll.u32 %v1601_v8, 16  ;;  %v319_v13 = vshrl.u32 %v1601_v8, 16  ;;  %v522_v32 = vrot.slane %v1601_v8, 1  ;;  %s665_s25 = scalar_select %p664_p6, 1, 0 }
  0x15   : > { %s673_s26 = scalar_select %p672_p7, 1, 0 }
  0x16   : > { %v323_v14 = vrot.slane %v321_v10, 1  ;;  %1358 = vmatpush3.bf16.msra.mxu1 %v1466_v35  ;;  %v666_v59 = vstv %s665_s25  ;;  %s276_s25 = scalar_lea.vmem %s1834_s7, %s1238_s10 }
  0x17   : > { %1302 = vmatpush3.bf16.msra.mxu0 %v1443_v7  ;;  %1359 = vmatprep.subr.bf16.mxu1 %v1508_v1  ;;  %v674_v61 = vstv %s673_s26  ;;  %vm667_vm2 = vcmp.eq.s32.totalorder %v666_v59, 1 }
  0x18   : > { %1303 = vmatprep.subr.bf16.mxu0 %v1508_v1  ;;  %v324_v16 = vor.u32 %v323_v14, %v319_v13  ;;  %vm675_vm4 = vcmp.eq.s32.totalorder %v674_v61, 1  ;;  %vm1728_vm5 = vmand %vm662_vm1, %vm667_vm2  ;;  %v1472_v14 = vld [vmem:[%s1829_s2] sm:$0xff]  }
  0x19   : > { %vm1732_vm6 = vmand %vm671_vm3, %vm675_vm4 }
  0x1a   : > { %1360 = vmatpush3.bf16.msra.mxu1 %v1467_v36  ;;  %vm1204_vm7 = vmneg %vm1732_vm6 }
  0x1b   : > { %1304 = vmatpush3.bf16.msra.mxu0 %v1444_v9  ;;  %1361 = vmatprep.subr.bf16.mxu1 %v1508_v1  ;;  %vm1205_vm8 = vmneg %vm1728_vm5 }
  0x1c   : > { %1305 = vmatprep.subr.bf16.mxu0 %v1508_v1  ;;  %vm1206_vm9 = vmpackc.low %vm1204_vm7, %vm1205_vm8 }
  0x1e   : > { %1362 = vmatpush3.bf16.msra.mxu1 %v1468_v37 }
  0x1f   : > { %1306 = vmatpush3.bf16.msra.mxu0 %v1445_v11  ;;  %1363 = vmatprep.subr.bf16.mxu1 %v1508_v1 }
  0x20   : > { %1307 = vmatprep.subr.bf16.mxu0 %v1508_v1 }
  0x22   : > { %1364 = vmatpush3.bf16.msra.mxu1 %v1469_v38 }
  0x23   : > { %1308 = vmatpush3.bf16.msra.mxu0 %v1446_v12  ;;  %1365 = vmatprep.subr.bf16.mxu1 %v1508_v1 }
  0x24   : > { %1313 = vmatprep.subr.bf16.mxu0 %v1508_v1 }
  0x26   : > { %1310 = vmatmul.mubr.bf16.vlgmr.msra.gmra.mrb[0].mxu0 %v324_v16  ;;  %1366 = vmatpush3.bf16.msra.mxu1 %v1470_v39  ;;  %v1473_v16 = vld [vmem:[%s1829_s2 + $0x8] sm:$0xff]  }
  0x27   : > { %1314 = vmatpush3.bf16.msra.mxu0 %v1448_v15  ;;  %1329 = vmatprep.mubr.msk.bf16.mxu0 %vm1509_vm0, %v1508_v1 }
  0x28   : > { %1315 = vmatprep.subr.bf16.mxu0 %v1508_v1  ;;  %1367 = vmatprep.subr.bf16.mxu1 %v1508_v1 }
  0x2a   : > { %1368 = vmatpush3.bf16.msra.mxu1 %v1471_v40 }
  0x2b   : > { %1316 = vmatpush3.bf16.msra.mxu0 %v1449_v17  ;;  %1373 = vmatprep.subr.bf16.mxu1 %v1508_v1  ;;  %v1474_v17 = vld [vmem:[%s1829_s2 + $0x10] sm:$0xff]  }
  0x2c   : > { %1317 = vmatprep.subr.bf16.mxu0 %v1508_v1 }
  0x2f   : > { %1318 = vmatpush3.bf16.msra.mxu0 %v1450_v18  ;;  %v1475_v18 = vld [vmem:[%s1829_s2 + $0x18] sm:$0xff]  }
  0x30   : > { %1319 = vmatprep.subr.bf16.mxu0 %v1508_v1 }
  0x33   : > { %1320 = vmatpush3.bf16.msra.mxu0 %v1451_v19  ;;  %v1476_v19 = vld [vmem:[%s1829_s2 + $0x20] sm:$0xff]  }
  0x34   : > { %1321 = vmatprep.subr.bf16.mxu0 %v1508_v1 }
  0x37   : > { %1322 = vmatpush3.bf16.msra.mxu0 %v1452_v20  ;;  %v1477_v20 = vld [vmem:[%s1829_s2 + $0x28] sm:$0xff]  }
  0x38   : > { %1323 = vmatprep.subr.bf16.mxu0 %v1508_v1 }
  0x3b   : > { %1324 = vmatpush3.bf16.msra.mxu0 %v1453_v21  ;;  %v1478_v21 = vld [vmem:[%s1829_s2 + $0x30] sm:$0xff]  }
  0x3c   : > { %1325 = vmatprep.subr.bf16.mxu0 %v1508_v1 }
  0x3f   : > { %1326 = vmatpush3.bf16.msra.mxu0 %v1454_v22  ;;  %v1479_v22 = vld [vmem:[%s1829_s2 + $0x38] sm:$0xff]  }
  0x40   : > { %1327 = vmatprep.subr.bf16.mxu0 %v1508_v1 }
  0x43   : > { %1328 = vmatpush3.bf16.msra.mxu0 %v1455_v23  ;;  %v1480_v23 = vld [vmem:[%s1829_s2 + $0x80] sm:$0xff]  }
  0x44   : > { %1333 = vmatprep.subr.bf16.mxu0 %v1508_v1 }
  0x46   : > { %1330 = vmatmul.mubr.bf16.vlgmr.msra.gmra.mrb[0].mxu0 %v1601_v8 }
  0x47   : > { %1334 = vmatpush3.bf16.msra.mxu0 %v1456_v24  ;;  %1349 = vmatprep.mubr.msk.bf16.mxu0 %vm1509_vm0, %v1508_v1  ;;  %v1481_v24 = vld [vmem:[%s1829_s2 + $0x88] sm:$0xff]  }
  0x48   : > { %1335 = vmatprep.subr.bf16.mxu0 %v1508_v1 }
  0x4b   : > { %1336 = vmatpush3.bf16.msra.mxu0 %v1457_v25  ;;  %v1482_v25 = vld [vmem:[%s1829_s2 + $0x90] sm:$0xff]  }
  0x4c   : > { %1337 = vmatprep.subr.bf16.mxu0 %v1508_v1 }
  0x4f   : > { %1338 = vmatpush3.bf16.msra.mxu0 %v1458_v26  ;;  %v1483_v26 = vld [vmem:[%s1829_s2 + $0x98] sm:$0xff]  }
  0x50   : > { %1339 = vmatprep.subr.bf16.mxu0 %v1508_v1 }
  0x53   : > { %1340 = vmatpush3.bf16.msra.mxu0 %v1459_v27  ;;  %v1484_v27 = vld [vmem:[%s1829_s2 + $0xa0] sm:$0xff]  }
  0x54   : > { %1341 = vmatprep.subr.bf16.mxu0 %v1508_v1 }
  0x57   : > { %1342 = vmatpush3.bf16.msra.mxu0 %v1460_v28  ;;  %v1485_v28 = vld [vmem:[%s1829_s2 + $0xa8] sm:$0xff]  }
  0x58   : > { %1343 = vmatprep.subr.bf16.mxu0 %v1508_v1 }
  0x5b   : > { %1344 = vmatpush3.bf16.msra.mxu0 %v1461_v29  ;;  %v1486_v29 = vld [vmem:[%s1829_s2 + $0xb0] sm:$0xff]  }
  0x5c   : > { %1345 = vmatprep.subr.bf16.mxu0 %v1508_v1 }
  0x5f   : > { %1346 = vmatpush3.bf16.msra.mxu0 %v1462_v30  ;;  %v1487_v30 = vld [vmem:[%s1829_s2 + $0xb8] sm:$0xff]  }
  0x60   : > { %1347 = vmatprep.subr.bf16.mxu0 %v1508_v1 }
  0x63   : > { %1348 = vmatpush3.bf16.msra.mxu0 %v1463_v31 }
  0x66   : > { %1350 = vmatmul.mubr.bf16.vlgmr.msra.gmra.mrb[0].mxu0 %v522_v32  ;;  %v1233_v32 = vld [vmem:[%s1832_s5] ss:$0 sm:$0xff] }
 0x139   : > { %v606_v42 = vpop.f32.mrb[0].mxu0 }
 0x13a   : > { %v622_v44 = vmul.f32 %v1165_v41, %v606_v42  ;;  %v1351_v45 = vpop.f32.mrb[1].mxu0  ;;  %v1036_v42 = vunpack.c.l.bf16 %v1591_v5 }
 0x13b   : > { %v609_v46 = vpop.f32.mrb[2].mxu0 }
 0x13c   : > { %v631_v47 = vadd.f32 %v1166_v43, %v622_v44  ;;  %v623_v48 = vmul.f32 %v1165_v41, %v609_v46  ;;  %v1352_v49 = vpop.f32.mrb[3].mxu0  ;;  %v1041_v44 = vrot.slane %v1036_v42, 2 }
 0x13e   : > { %v1167_v50 = vmul.f32 -1.442695, %v631_v47  ;;  %v632_v51 = vadd.f32 %v1166_v43, %v623_v48  ;;  %v1037_v43 = vunpack.c.l.bf16 %v1593_v6 }
 0x140   : > { %1488 = vpow2.f32 %v1167_v50  ;;  %v1168_v52 = vmul.f32 -1.442695, %v632_v51  ;;  %v1042_v45 = vrot.slane %v1037_v43, 2 }
 0x142   : > { %1490 = vpow2.f32 %v1168_v52 }
 0x14a   : > { %v1489_v53 = vpop.eup %1488 }
 0x14b   : > { %v639_v55 = vadd.f32 1.0, %v1489_v53 }
 0x14c   : > { %v1491_v56 = vpop.eup %1490 }
 0x14d   : > { %1492 = vrcp.f32 %v639_v55  ;;  %v640_v57 = vadd.f32 1.0, %v1491_v56 }
 0x14f   : > { %1494 = vrcp.f32 %v640_v57 }
 0x157   : > { %v1493_v62 = vpop.eup %1492 }
 0x158   : > { %v645_v63 = vmul.f32 %v1493_v62, %v631_v47  ;;  %v1043_v47 = vsel %vm1040_vm10, %v1041_v44, %v1042_v45 }
 0x159   : > { %v1495_v2 = vpop.eup %1494 }
 0x15a   : > { %v646_v4 = vmul.f32 %v1495_v2, %v632_v51  ;;  %v684_v7 = vsel %vm1728_vm5, 0.0, %v645_v63 }
 0x15c   : > { %v685_v8 = vsel %vm1732_vm6, 0.0, %v646_v4  ;;  %v1207_v9 = vpack.c.bf16 %v646_v4, %v645_v63 }
 0x15d   : > { %v686_v10 = vpack.c.bf16 %v685_v8, %v684_v7 }
 0x15f   : > { %v723_v11 = vshll.u32 %v686_v10, 16  ;;  %v721_v12 = vshrl.u32 %v686_v10, 16  ;;  %v922_v31 = vrot.slane %v686_v10, 1 }
 0x161   : > { %v725_v13 = vrot.slane %v723_v11, 1 }
 0x163   : > { %v726_v15 = vor.u32 %v725_v13, %v721_v12 }
 0x165   : > { %1370 = vmatmul.mubr.bf16.vlgmr.msra.gmra.mrb[0].mxu1 %v726_v15 }
 0x166   : > { %1374 = vmatpush3.bf16.msra.mxu1 %v1472_v14  ;;  %1389 = vmatprep.mubr.msk.bf16.mxu1 %vm1509_vm0, %v1508_v1 }
 0x167   : > { %1375 = vmatprep.subr.bf16.mxu1 %v1508_v1 }
 0x16a   : > { %1376 = vmatpush3.bf16.msra.mxu1 %v1473_v16 }
 0x16b   : > { %1377 = vmatprep.subr.bf16.mxu1 %v1508_v1 }
 0x16e   : > { %1378 = vmatpush3.bf16.msra.mxu1 %v1474_v17 }
 0x16f   : > { %1379 = vmatprep.subr.bf16.mxu1 %v1508_v1 }
 0x172   : > { %1380 = vmatpush3.bf16.msra.mxu1 %v1475_v18 }
 0x173   : > { %1381 = vmatprep.subr.bf16.mxu1 %v1508_v1 }
 0x176   : > { %1382 = vmatpush3.bf16.msra.mxu1 %v1476_v19 }
 0x177   : > { %1383 = vmatprep.subr.bf16.mxu1 %v1508_v1 }
 0x17a   : > { %1384 = vmatpush3.bf16.msra.mxu1 %v1477_v20 }
 0x17b   : > { %1385 = vmatprep.subr.bf16.mxu1 %v1508_v1 }
 0x17e   : > { %1386 = vmatpush3.bf16.msra.mxu1 %v1478_v21 }
 0x17f   : > { %1387 = vmatprep.subr.bf16.mxu1 %v1508_v1 }
 0x182   : > { %1388 = vmatpush3.bf16.msra.mxu1 %v1479_v22 }
 0x183   : > { %1393 = vmatprep.subr.bf16.mxu1 %v1508_v1 }
 0x185   : > { %1390 = vmatmul.mubr.msk.bf16.vlgmr.msra.gmra.mrb[0].mxu1 %vm1206_vm9, %v1207_v9 }
 0x186   : > { %1394 = vmatpush3.bf16.msra.mxu1 %v1480_v23  ;;  %1409 = vmatprep.mubr.msk.bf16.mxu1 %vm1509_vm0, %v1508_v1 }
 0x187   : > { %1395 = vmatprep.subr.bf16.mxu1 %v1508_v1 }
 0x18a   : > { %1396 = vmatpush3.bf16.msra.mxu1 %v1481_v24 }
 0x18b   : > { %1397 = vmatprep.subr.bf16.mxu1 %v1508_v1 }
 0x18e   : > { %1398 = vmatpush3.bf16.msra.mxu1 %v1482_v25 }
 0x18f   : > { %1399 = vmatprep.subr.bf16.mxu1 %v1508_v1 }
 0x192   : > { %1400 = vmatpush3.bf16.msra.mxu1 %v1483_v26 }
 0x193   : > { %1401 = vmatprep.subr.bf16.mxu1 %v1508_v1 }
 0x196   : > { %1402 = vmatpush3.bf16.msra.mxu1 %v1484_v27 }
 0x197   : > { %1403 = vmatprep.subr.bf16.mxu1 %v1508_v1 }
 0x19a   : > { %1404 = vmatpush3.bf16.msra.mxu1 %v1485_v28 }
 0x19b   : > { %1405 = vmatprep.subr.bf16.mxu1 %v1508_v1 }
 0x19e   : > { %1406 = vmatpush3.bf16.msra.mxu1 %v1486_v29 }
 0x19f   : > { %1407 = vmatprep.subr.bf16.mxu1 %v1508_v1 }
 0x1a2   : > { %1408 = vmatpush3.bf16.msra.mxu1 %v1487_v30 }
 0x1a5   : > { %1410 = vmatmul.mubr.bf16.vlgmr.msra.gmra.mrb[0].mxu1 %v922_v31 }
 0x278   : > { %v1006_v33 = vpop.f32.mrb[0].mxu1 }
 0x279   : > { %v1020_v35 = vmul.f32 %v1233_v32, %v1006_v33  ;;  %v1411_v36 = vpop.f32.mrb[1].mxu1 }
 0x27a   : > { %v1009_v37 = vpop.f32.mrb[2].mxu1 }
 0x27b   : > { %v1028_v38 = vadd.f32 %v1234_v34, %v1020_v35  ;;  %v1412_v39 = vpop.f32.mrb[3].mxu1 }
 0x27d   : > { %v1235_v40 = vmul.f32 -1.442695, %v1028_v38 }
 0x27f   : > { %1496 = vpow2.f32 %v1235_v40 }
 0x289   : > { %v1497_v1 = vpop.eup %1496 }
 0x28a   : > { %v1032_v41 = vadd.f32 1.0, %v1497_v1 }
 0x28c   : > { %1498 = vrcp.f32 %v1032_v41 }
 0x296   : > { %v1499_v46 = vpop.eup %1498 }
 0x297   : > { %v1035_v48 = vmul.f32 %v1499_v46, %v1028_v38 }
 0x299   : > { %v1045_v49 = vadd.f32 %v1043_v47, %v1035_v48 }
 0x29b   : > { %1046 = vst [vmem:[%s276_s25] sm:$0xff] %v1045_v49 }
 0x29c PF: > { %s17_s24 = sadd.s32 1, %s1506_s24  }
 0x29d   : > { %p14_p8 = scmp.ge.s32.totalorder %s17_s24, 6  }
 0x29f   :  { %16 = sbr.rel (!%p14_p8) target bundleno = 1 (0x1), region = 82 }

</bundles_post_ra>
